<compile_context>
chip_gen: v7x
topology: tpu7x:2x2x1
jax: 0.10.0
libtpu: 0.0.40
codegen_flags: <defaults>
</compile_context>

<pallas_src>
import math

import jax
import jax.numpy as jnp
from jax.experimental import pallas as pl
from jax.experimental.pallas import tpu as pltpu


def _mlp_kernel(x8_ref, w1b_ref, w2_ref, p_ref, b3_ref, o_ref):
    # x8_ref : (8, TB)   f32   rows [x0, x1, 1, 0...], batch on lanes
    # w1b_ref: (64, 8)   bf16  [w1 | b1 | 0...]  (fc1 weight + bias folded)
    # w2_ref : (32, 64)  bf16  fc2 weight, PyTorch (out, in) layout
    # p_ref  : (32, 128) f32   col 0 = fc2 bias, col 1 = fc3 weight
    # b3_ref : (1, 1)    f32   fc3 bias, SMEM scalar
    # o_ref  : (1, TB)   f32   lane-dense output
    x8 = x8_ref[...].astype(jnp.bfloat16)                       # (8, TB)

    # fc1 (+ bias) on the MXU: (64,8) @ (8,TB), f32 accumulate.
    h1 = jnp.dot(w1b_ref[...], x8,
                 preferred_element_type=jnp.float32)            # (64, TB)
    h1 = jnp.maximum(h1, 0.0)

    # fc2 on the MXU: bf16 in / f32 acc.
    h2 = jnp.dot(w2_ref[...], h1.astype(jnp.bfloat16),
                 preferred_element_type=jnp.float32)            # (32, TB)
    b2 = p_ref[:, 0:1]                                          # (32, 1)
    w3 = p_ref[:, 1:2]                                          # (32, 1)
    h2 = jnp.maximum(h2 + b2, 0.0)

    # fc3 (N=1): elementwise multiply + cross-sublane (XLU) reduction.
    out = jnp.sum(h2 * w3, axis=0, keepdims=True) + b3_ref[0, 0]  # (1, TB)
    o_ref[...] = out.astype(o_ref.dtype)


def _round_up(n, m):
    return ((n + m - 1) // m) * m


def pack_params(params):
    """One-time packing of PyTorch-layout params into kernel operands.
    Hoisted out of the per-call path (do this at init / param update time)."""
    w1, b1, w2, b2, w3, b3 = (jnp.asarray(p, jnp.float32) for p in params)
    # fc1 weight + bias folded into one (64, 8) bf16 LHS for the MXU.
    w1b = jnp.zeros((64, 8), jnp.float32)
    w1b = w1b.at[:, 0:2].set(w1).at[:, 2].set(b1)
    w1b = w1b.astype(jnp.bfloat16)
    w2_bf16 = w2.astype(jnp.bfloat16)                 # (32, 64) MXU operand
    # Small f32 params in one (8,128)-aligned slab -> single resident DMA.
    slab = jnp.zeros((32, 128), jnp.float32)
    slab = slab.at[:, 0].set(b2).at[:, 1].set(w3[0, :])
    b3_smem = b3.reshape(1, 1)                        # SMEM scalar
    return (w1b, w2_bf16, slab, b3_smem)


def weight_prediction_model(x, packed_params, *, tb_max=8192):
    """x: (B, 2) f32 -> (B, 1) f32.  packed_params from pack_params()."""
    w1b, w2_bf16, slab, b3_smem = packed_params
    B = x.shape[0]

    # Lane-dense batch tile (multiple of 128).  Large to amortize per-step
    # overhead, but guarantee >= 2 grid steps when the batch allows it so the
    # "parallel" axis shards across both TensorCores on v7x.
    b128 = _round_up(max(B, 1), 128)
    if b128 <= 128:
        tb = 128
    else:
        tb = min(tb_max, _round_up(pl.cdiv(b128, 2), 128))
    Bp = _round_up(b128, tb)
    n_steps = Bp // tb

    # (8, Bp) RHS: rows [x0, x1, 1, 0...], batch on lanes, zero-padded tail.
    x_aug = jnp.concatenate(
        [x.astype(jnp.float32), jnp.ones((B, 1), jnp.float32)], axis=1).T  # (3, B)
    x8 = jnp.pad(x_aug, ((0, 5), (0, Bp - B)))

    flops = 2 * (64 * 8 + 32 * 64 + 32) * Bp
    bytes_accessed = (8 * Bp * 4) + (Bp * 4) + (64 * 8 * 2) + (32 * 64 * 2) \
        + (32 * 128 * 4) + 4

    out_t = pl.pallas_call(
        _mlp_kernel,
        out_shape=jax.ShapeDtypeStruct((1, Bp), jnp.float32),
        grid=(n_steps,),
        in_specs=[
            pl.BlockSpec((8, tb), lambda i: (0, i)),             # x8, batch-tiled
            pl.BlockSpec((64, 8), lambda i: (0, 0)),             # fc1 [w1|b1] bf16
            pl.BlockSpec((32, 64), lambda i: (0, 0)),            # fc2 weight bf16
            pl.BlockSpec((32, 128), lambda i: (0, 0)),           # b2 / w3 slab f32
            pl.BlockSpec(memory_space=pltpu.MemorySpace.SMEM),   # fc3 bias scalar
        ],
        out_specs=pl.BlockSpec((1, tb), lambda i: (0, i)),       # lane-dense output
        compiler_params=pltpu.CompilerParams(
            dimension_semantics=("parallel",),                   # megacore on v7x
            vmem_limit_bytes=32 << 20,                           # headroom for tb=8192
        ),
        cost_estimate=pl.CostEstimate(flops=flops, transcendentals=0,
                                      bytes_accessed=bytes_accessed),
    )(x8, w1b, w2_bf16, slab, b3_smem)

    # Padded tail of out_t must never be consumed directly (relu(b1) leaks
    # through fc2/fc3 on zero-padded rows); it is sliced off here.
    return out_t[0, :B].reshape(B, 1)


def init_params(key):
    """PyTorch nn.Linear default init: U(-1/sqrt(fan_in), 1/sqrt(fan_in)),
    weights in PyTorch (out, in) layout."""
    def linear(k, fan_in, fan_out):
        kw, kb = jax.random.split(k)
        bound = 1.0 / math.sqrt(fan_in)
        w = jax.random.uniform(kw, (fan_out, fan_in), jnp.float32, -bound, bound)
        b = jax.random.uniform(kb, (fan_out,), jnp.float32, -bound, bound)
        return w, b

    k1, k2, k3 = jax.random.split(key, 3)
    w1, b1 = linear(k1, 2, 64)
    w2, b2 = linear(k2, 64, 32)
    w3, b3 = linear(k3, 32, 1)
    return (w1, b1, w2, b2, w3, b3)


def _reference(x, params):
    w1, b1, w2, b2, w3, b3 = params
    h = jnp.maximum(x @ w1.T + b1, 0.0)
    h = jnp.maximum(h @ w2.T + b2, 0.0)
    return h @ w3.T + b3


if __name__ == "__main__":
    key = jax.random.PRNGKey(0)
    kx1, kx2, kp = jax.random.split(key, 3)
    params = init_params(kp)
    packed = pack_params(params)        # hoisted, one-time packing

    fwd = jax.jit(weight_prediction_model)

    # Small batch (single grid step).
    B = 8
    x = jax.random.normal(kx1, (B, 2), jnp.float32)
    out = jax.block_until_ready(fwd(x, packed))
    ref = _reference(x, params)
    assert out.shape == (B, 1), out.shape
    # fc1/fc2 run with bf16 MXU feeds (f32 accumulate) -> slightly loose tol.
    assert jnp.allclose(out, ref, atol=2e-2, rtol=2e-2), "mismatch vs ref (B=8)"

    # Ragged batch: >= 2 pipelined grid steps + padding slice-off.
    B2 = 300
    x2 = jax.random.normal(kx2, (B2, 2), jnp.float32)
    out2 = jax.block_until_ready(fwd(x2, packed))
    ref2 = _reference(x2, params)
    assert out2.shape == (B2, 1), out2.shape
    assert jnp.allclose(out2, ref2, atol=2e-2, rtol=2e-2), "mismatch vs ref (B=300)"

    print("KERNEL_OK")
</pallas_src>

<mosaic_0001>
module attributes {stable_mosaic.version = 11 : i64} {
  func.func @_mlp_kernel(%arg0: i32, %arg1: memref<8x128xf32, #tpu.memory_space<vmem>>, %arg2: memref<64x8xbf16, #tpu.memory_space<vmem>>, %arg3: memref<32x64xbf16, #tpu.memory_space<vmem>>, %arg4: memref<32x128xf32, #tpu.memory_space<vmem>>, %arg5: memref<1x1xf32, #tpu.memory_space<smem>>, %arg6: memref<1x128xf32, #tpu.memory_space<vmem>>) attributes {dimension_semantics = [#tpu.dimension_semantics<parallel>], iteration_bounds = array<i64: 1>, scalar_prefetch = 0 : i64, scratch_operands = 0 : i64, tpu.core_type = #tpu.core_type<tc>, window_params = [{transform_indices = @transform_0, window_bounds = array<i64: 8, 128>}, {pipeline_mode = #tpu.pipeline_mode<synchronous>, transform_indices = @transform_1, window_bounds = array<i64: 64, 8>}, {pipeline_mode = #tpu.pipeline_mode<synchronous>, transform_indices = @transform_2, window_bounds = array<i64: 32, 64>}, {pipeline_mode = #tpu.pipeline_mode<synchronous>, transform_indices = @transform_3, window_bounds = array<i64: 32, 128>}, {transform_indices = @transform_4, window_bounds = array<i64: 1, 1>}, {transform_indices = @transform_5, window_bounds = array<i64: 1, 128>}]} {
    %c0 = arith.constant 0 : index
    %c0_0 = arith.constant 0 : index
    %0 = vector.load %arg1[%c0, %c0_0] : memref<8x128xf32, #tpu.memory_space<vmem>>, vector<8x128xf32>
    %1 = arith.truncf %0 : vector<8x128xf32> to vector<8x128xbf16>
    %c0_1 = arith.constant 0 : index
    %c0_2 = arith.constant 0 : index
    %2 = vector.load %arg2[%c0_1, %c0_2] : memref<64x8xbf16, #tpu.memory_space<vmem>>, vector<64x8xbf16>
    %cst = arith.constant dense<0.000000e+00> : vector<64x128xf32>
    %3 = tpu.matmul %2, %1, %cst {dimension_numbers = #tpu.dot_dimension_numbers<[1], [0], [0], [1], [0, 0, 1, 1], [], []>} : vector<64x8xbf16>, vector<8x128xbf16>, vector<64x128xf32> -> vector<64x128xf32>
    %cst_3 = arith.constant 0.000000e+00 : f32
    %4 = vector.broadcast %cst_3 : f32 to vector<64x128xf32>
    %5 = arith.maximumf %3, %4 : vector<64x128xf32>
    %c0_4 = arith.constant 0 : index
    %c0_5 = arith.constant 0 : index
    %6 = vector.load %arg3[%c0_4, %c0_5] : memref<32x64xbf16, #tpu.memory_space<vmem>>, vector<32x64xbf16>
    %7 = arith.truncf %5 : vector<64x128xf32> to vector<64x128xbf16>
    %cst_6 = arith.constant dense<0.000000e+00> : vector<32x128xf32>
    %8 = tpu.matmul %6, %7, %cst_6 {dimension_numbers = #tpu.dot_dimension_numbers<[1], [0], [0], [1], [0, 0, 1, 1], [], []>} : vector<32x64xbf16>, vector<64x128xbf16>, vector<32x128xf32> -> vector<32x128xf32>
    %c0_7 = arith.constant 0 : index
    %c0_8 = arith.constant 0 : index
    %9 = vector.load %arg4[%c0_7, %c0_8] : memref<32x128xf32, #tpu.memory_space<vmem>>, vector<32x1xf32>
    %c0_9 = arith.constant 0 : index
    %c1 = arith.constant 1 : index
    %10 = vector.load %arg4[%c0_9, %c1] : memref<32x128xf32, #tpu.memory_space<vmem>>, vector<32x1xf32>
    %11 = vector.broadcast %9 : vector<32x1xf32> to vector<32x128xf32>
    %12 = arith.addf %8, %11 : vector<32x128xf32>
    %cst_10 = arith.constant 0.000000e+00 : f32
    %13 = vector.broadcast %cst_10 : f32 to vector<32x128xf32>
    %14 = arith.maximumf %12, %13 : vector<32x128xf32>
    %15 = vector.broadcast %10 : vector<32x1xf32> to vector<32x128xf32>
    %16 = arith.mulf %14, %15 : vector<32x128xf32>
    %cst_11 = arith.constant dense<0.000000e+00> : vector<128xf32>
    %17 = vector.multi_reduction <add>, %16, %cst_11 [0] : vector<32x128xf32> to vector<128xf32>
    %18 = vector.shape_cast %17 : vector<128xf32> to vector<1x128xf32>
    %c0_12 = arith.constant 0 : index
    %c0_13 = arith.constant 0 : index
    %19 = memref.load %arg5[%c0_12, %c0_13] : memref<1x1xf32, #tpu.memory_space<smem>>
    %20 = vector.broadcast %19 : f32 to vector<1x128xf32>
    %21 = arith.addf %18, %20 : vector<1x128xf32>
    %c0_14 = arith.constant 0 : index
    %c0_15 = arith.constant 0 : index
    %22 = vector.load %arg6[%c0_14, %c0_15] : memref<1x128xf32, #tpu.memory_space<vmem>>, vector<1x128xf32>
    tpu.vector_store %arg6[%c0_14, %c0_15], %21 {strides = array<i32>} : memref<1x128xf32, #tpu.memory_space<vmem>>, vector<1x128xf32>,
    return
  }
  func.func @transform_0(%arg0: i32) -> (i32, i32) {
    %c0_i32 = arith.constant 0 : i32
    %c0_i32_0 = arith.constant 0 : i32
    return %c0_i32, %arg0 : i32, i32
  }
  func.func @transform_1(%arg0: i32) -> (i32, i32) {
    %c0_i32 = arith.constant 0 : i32
    %c0_i32_0 = arith.constant 0 : i32
    %c0_i32_1 = arith.constant 0 : i32
    return %c0_i32, %c0_i32_0 : i32, i32
  }
  func.func @transform_2(%arg0: i32) -> (i32, i32) {
    %c0_i32 = arith.constant 0 : i32
    %c0_i32_0 = arith.constant 0 : i32
    %c0_i32_1 = arith.constant 0 : i32
    return %c0_i32, %c0_i32_0 : i32, i32
  }
  func.func @transform_3(%arg0: i32) -> (i32, i32) {
    %c0_i32 = arith.constant 0 : i32
    %c0_i32_0 = arith.constant 0 : i32
    %c0_i32_1 = arith.constant 0 : i32
    return %c0_i32, %c0_i32_0 : i32, i32
  }
  func.func @transform_4(%arg0: i32) -> (i32, i32) {
    %c0_i32 = arith.constant 0 : i32
    %c0_i32_0 = arith.constant 0 : i32
    %c0_i32_1 = arith.constant 0 : i32
    return %c0_i32, %c0_i32_0 : i32, i32
  }
  func.func @transform_5(%arg0: i32) -> (i32, i32) {
    %c0_i32 = arith.constant 0 : i32
    %c0_i32_0 = arith.constant 0 : i32
    return %c0_i32, %arg0 : i32, i32
  }
}

</mosaic_0001>

<bundles_post_ra>
// kernel: weight_prediction_model.1
= control target key start
LH: loop header
LB: loop body
LE: loop exit
PB: predicated region body
PF: predicated region fallthrough
CT: control target
= control target key end

     0   :  { %vm65_vm0 = vcmask 1043456   ;;  %vm52_vm1 = vcmask 64512   ;;  %vm184_vm2 = vcmask 523264   ;;  %v339_v8 = vmov 0   ;;  %s412_s0 = inlined_call_operand.vmem [shape: f32[8,128], index: 0, kind: input, shape index: {}]   ;;  %s413_s1 = inlined_call_operand.vmem [shape: bf16[64,8], index: 1, kind: input, shape index: {}]   ;;  %s414_s2 = inlined_call_operand.vmem [shape: bf16[32,64], index: 2, kind: input, shape index: {}]   ;;  %s415_s3 = inlined_call_operand.vmem [shape: f32[32,128], index: 3, kind: input, shape index: {}]   ;;  %s416_s4 = inlined_call_operand.<no memory space> [shape: f32[1,1], index: 4, kind: input, shape index: {}]   ;;  %s417_s5 = inlined_call_operand.vmem [shape: f32[1,128], index: 5, kind: output, shape index: {}]  }
   0x1   :  { %v22_v0 = vld [vmem:[%s412_s0] sm:$0xff]  ;;  %v334_v4 = vld [vmem:[%s413_s1 + $0x8] sm:$0xff]   ;;  %v335_v5 = vld [vmem:[%s413_s1 + $0x10] sm:$0xff]   ;;  %330 = vset.pattern.permute.xlu1 %v339_v8  ;;  %329 = vset.pattern.permute.xlu0 %v339_v8  ;;  %v340_v13 = vmov 1  }
   0x2   :  { %v23_v1 = vpack.c.bf16 %v22_v0, %v22_v0  ;;  %v333_v2 = vld [vmem:[%s413_s1] sm:$0xff]   ;;  %v336_v6 = vld [vmem:[%s413_s1 + $0x18] sm:$0xff]   ;;  %v152_v9 = vld [vmem:[%s415_s3 + $0x10] sm:$0xff] }
   0x3   :  { %306 = vmatprep.mubr.msk.bf16.mxu0 %vm52_vm1, %v333_v2  ;;  %v337_v7 = vld [vmem:[%s414_s2] sm:$0xff]   ;;  %166 = vperm.xlu1 %330, %v152_v9   ;;  %v153_v11 = vld [vmem:[%s415_s3 + $0x18] sm:$0xff]  ;;  %v151_v12 = vld [vmem:[%s415_s3 + $0x8] sm:$0xff] }
   0x4   :  { %326 = vmatprep.subr.msk.bf16.mxu0 %vm65_vm0, %v23_v1  ;;  %v67_v3 = vsel %vm65_vm0, %v23_v1, 0  ;;  %322 = vmatprep.mubr.msk.bf16.mxu1 %vm184_vm2, %v337_v7  ;;  %v150_v10 = vld [vmem:[%s415_s3] sm:$0xff]  ;;  %v338_v34 = vld [vmem:[%s414_s2 + $0x8] sm:$0xff]  }
   0x5   :  { %305 = vmatpush3.bf16.msra.mxu0 %v67_v3  ;;  %156 = vperm.xlu0 %329, %v150_v10   ;;  %v274_v3 = vstv %s416_s4 }
   0x7   :  { %171 = vperm.xlu1 %330, %v153_v11  }
   0x8   :  { %307 = vmatmul.mubr.msk.bf16.vlgmr.msra.gmra.mrb[0].mxu0 %vm52_vm1, %v334_v4 }
   0x9   :  { %310 = vmatprep.mubr.msk.bf16.mxu0 %vm52_vm1, %v335_v5  ;;  %161 = vperm.xlu0 %329, %v151_v12  }
   0xb   :  { %332 = vset.pattern.permute.xlu1 %v340_v13 }
   0xc   :  { %249 = vperm.xlu1 %332, %v151_v12  }
   0xd   :  { %331 = vset.pattern.permute.xlu0 %v340_v13 }
   0xe   :  { %245 = vperm.xlu0 %331, %v150_v10  }
  0x10   :  { %311 = vmatmul.mubr.msk.bf16.gmra.mrb[4].mxu0 %vm52_vm1, %v336_v6  ;;  %253 = vperm.xlu1 %332, %v152_v9  }
  0x12   :  { %257 = vperm.xlu0 %331, %v153_v11  }
  0x82   :  { %v167_v35 = vpop.permute.xlu1 %166 }
  0x84   :  { %v157_v36 = vpop.permute.xlu0 %156 }
  0x86   :  { %v172_v37 = vpop.permute.xlu1 %171 }
  0x88   :  { %v162_v38 = vpop.permute.xlu0 %161 }
  0x8b   :  { %v250_v40 = vpop.permute.xlu1 %249 }
  0x8d   :  { %v246_v45 = vpop.permute.xlu0 %245 }
  0x8f   :  { %v254_v52 = vpop.permute.xlu1 %253 }
  0x91   :  { %v258_v56 = vpop.permute.xlu0 %257 }
  0xdb   :  { %v308_v14 = vpop.f32.mrb[0].mxu0 }
  0xdc   :  { %v103_v15 = vpop.f32.mrb[1].mxu0  ;;  %v136_v17 = vmax.f32 %v308_v14, 0.0 }
  0xdd   :  { %v309_v16 = vpop.f32.mrb[2].mxu0  ;;  %v134_v20 = vmax.f32 %v103_v15, 0.0 }
  0xde   :  { %v137_v18 = vmax.f32 %v309_v16, 0.0  ;;  %v106_v19 = vpop.f32.mrb[3].mxu0 }
  0xdf   :  { %v135_v21 = vmax.f32 %v106_v19, 0.0 }
  0xe0   :  { %v147_v22 = vpack.c.bf16 %v137_v18, %v136_v17 }
  0xe1   :  { %v146_v23 = vpack.c.bf16 %v135_v21, %v134_v20 }
  0xe3   :  { %v312_v24 = vpop.f32.mrb[4].mxu0  ;;  %314 = vmatprep.subr.bf16.mxu1 %v146_v23 }
  0xe4   :  { %v119_v25 = vpop.f32.mrb[5].mxu0  ;;  %315 = vmatpush3.bf16.msra.mxu1 %v146_v23  ;;  %v140_v27 = vmax.f32 %v312_v24, 0.0 }
  0xe5   :  { %v313_v26 = vpop.f32.mrb[6].mxu0  ;;  %316 = vmatprep.subr.bf16.mxu1 %v147_v22  ;;  %v138_v30 = vmax.f32 %v119_v25, 0.0 }
  0xe6   :  { %v141_v28 = vmax.f32 %v313_v26, 0.0  ;;  %v122_v29 = vpop.f32.mrb[7].mxu0 }
  0xe7   :  { %v139_v31 = vmax.f32 %v122_v29, 0.0 }
  0xe8   :  { %v149_v32 = vpack.c.bf16 %v141_v28, %v140_v27  ;;  %317 = vmatpush3.bf16.msra.mxu1 %v147_v22 }
  0xe9   :  { %v148_v33 = vpack.c.bf16 %v139_v31, %v138_v30 }
  0xeb   :  { %318 = vmatprep.subr.bf16.mxu1 %v148_v33 }
  0xec   :  { %319 = vmatpush3.bf16.msra.mxu1 %v148_v33 }
  0xed   :  { %320 = vmatprep.subr.bf16.mxu1 %v149_v32 }
  0xf0   :  { %321 = vmatpush3.bf16.msra.mxu1 %v149_v32 }
  0xf3   :  { %323 = vmatmul.mubr.msk.bf16.vlgmr.msra.gmra.mrb[0].mxu1 %vm184_vm2, %v338_v34 }
 0x1c6   :  { %v324_v39 = vpop.f32.mrb[0].mxu1 }
 0x1c7   :  { %v225_v41 = vpop.f32.mrb[1].mxu1  ;;  %v234_v42 = vadd.f32 %v324_v39, %v167_v35 }
 0x1c8   :  { %v226_v43 = vadd.f32 %v225_v41, %v157_v36  ;;  %v325_v44 = vpop.f32.mrb[2].mxu1 }
 0x1c9   :  { %v228_v46 = vpop.f32.mrb[3].mxu1  ;;  %v237_v48 = vadd.f32 %v325_v44, %v172_v37  ;;  %v242_v50 = vmax.f32 %v234_v42, 0.0 }
 0x1ca   :  { %v240_v47 = vmax.f32 %v226_v43, 0.0  ;;  %v229_v49 = vadd.f32 %v228_v46, %v162_v38 }
 0x1cb   :  { %v243_v54 = vmax.f32 %v237_v48, 0.0  ;;  %v262_v57 = vmul.f32 %v254_v52, %v242_v50 }
 0x1cc   :  { %v241_v51 = vmax.f32 %v229_v49, 0.0  ;;  %v260_v53 = vmul.f32 %v246_v45, %v240_v47 }
 0x1cd   :  { %v263_v60 = vmul.f32 %v258_v56, %v243_v54 }
 0x1ce   :  { %v261_v55 = vmul.f32 %v250_v40, %v241_v51 }
 0x1d0   :  { %v264_v58 = vadd.f32 %v261_v55, %v260_v53 }
 0x1d2   :  { %v265_v59 = vadd.f32 %v264_v58, %v262_v57 }
 0x1d4   :  { %v266_v61 = vadd.f32 %v265_v59, %v263_v60 }
 0x1d6   :  { %v267_v62 = vrot.slane %v266_v61, 4 }
 0x1d8   :  { %v268_v63 = vadd.f32 %v267_v62, %v266_v61 }
 0x1da   :  { %v269_v0 = vrot.slane %v268_v63, 2 }
 0x1dc   :  { %v270_v1 = vadd.f32 %v269_v0, %v268_v63 }
 0x1de   :  { %v271_v2 = vrot.slane %v270_v1, 1 }
 0x1e0   :  { %v272_v4 = vadd.f32 %v271_v2, %v270_v1 }
 0x1e2   :  { %v275_v5 = vadd.f32 %v274_v3, %v272_v4 }
 0x1e4   :  { %276 = vst [vmem:[%s417_s5] sm:$0x1] %v275_v5 }

</bundles_post_ra>
